<compile_context>
chip_gen: v5e
topology: v5e:2x2
jax: 0.10.0
libtpu: 0.0.40
codegen_flags: <defaults>
</compile_context>

<pallas_src>
import functools

import jax
import jax.numpy as jnp
from jax.experimental import pallas as pl
from jax.experimental.pallas import tpu as pltpu

LEAKY_SLOPE = 0.01     # torch.nn.LeakyReLU default negative_slope
OUT_PAD = 128          # lane-dense padded output width (one full lane tile)
NEG_BIG = -1e30        # padding bias value -> exp() == 0, softmax unchanged
SMALL_M = 256          # at/below this row count use the no-grid path
TM = 256               # row tile for the gridded path (safe on v5e/v6e/v7x)


def mlp_kernel(x_ref, w1_ref, b1_ref, w2_ref, b2_ref, o_ref):
    """Fused fc1 -> LeakyReLU -> (dropout = identity) -> fc2 -> softmax(dim=1).

    x_ref : (TM, K)       f32   (cast to bf16 in-kernel for the MXU)
    w1_ref: (K, H)        bf16
    b1_ref: (1, H)        f32
    w2_ref: (H, OUT_PAD)  bf16  (columns >= out_features are zero)
    b2_ref: (1, OUT_PAD)  f32   (columns >= out_features are NEG_BIG)
    o_ref : (TM, OUT_PAD) f32   (lane-dense; padded lanes are exactly 0.0)
    """
    x = x_ref[...].astype(jnp.bfloat16)                           # in-kernel cast
    # fc1 on the MXU (bf16 operands, f32 accumulation); epilogue in f32.
    h = jnp.dot(x, w1_ref[...], preferred_element_type=jnp.float32)
    h = h + b1_ref[...]                                           # (TM, H) f32
    h = jnp.where(h > 0, h, LEAKY_SLOPE * h)                      # LeakyReLU
    # TODO(synk): dropout implemented in eval mode (identity); training-mode
    # p=0.5 masking would use pltpu.prng_seed + pltpu.prng_random_bits.
    # fc2 on the MXU; padded output columns get 0 from w2 and NEG_BIG from b2.
    y = jnp.dot(h.astype(jnp.bfloat16), w2_ref[...],
                preferred_element_type=jnp.float32)
    y = y + b2_ref[...]                                           # (TM, OUT_PAD)
    # Numerically stable softmax over dim=1; padded lanes contribute exp()==0.
    y = y - jnp.max(y, axis=1, keepdims=True)
    e = jnp.exp(y)
    denom = jnp.sum(e, axis=1, keepdims=True)
    r = pl.reciprocal(denom, approx=True)                         # EUP recip
    r = r * (2.0 - denom * r)                                     # Newton step
    o_ref[...] = e * r


def prepare_params(w1, b1, w2, b2):
    """One-time parameter preprocessing (hoisted out of the per-call wrapper).

    w1: (in, hidden), b1: (hidden,), w2: (hidden, out), b2: (out,)
    (weights already stored transposed vs. torch.nn.Linear)
    """
    hidden = w1.shape[1]
    out = w2.shape[1]
    assert out <= OUT_PAD
    w1_p = w1.astype(jnp.bfloat16)                                  # (K, H)
    b1_p = b1.reshape(1, hidden).astype(jnp.float32)                # (1, H)
    w2_p = jnp.zeros((hidden, OUT_PAD), jnp.bfloat16)
    w2_p = w2_p.at[:, :out].set(w2.astype(jnp.bfloat16))            # (H, 128)
    # NOTE: b2_p must stay float32 — NEG_BIG would overflow/inf in bf16 and
    # could produce NaNs after the max-subtraction in the softmax.
    b2_p = jnp.full((1, OUT_PAD), NEG_BIG, jnp.float32)
    b2_p = b2_p.at[0, :out].set(b2.astype(jnp.float32))             # (1, 128)
    return w1_p, b1_p, w2_p, b2_p, out


@jax.jit
def mlp_forward(x_nchw, w1_p, b1_p, w2_p, b2_p):
    """Returns the lane-dense padded probabilities (M, OUT_PAD); columns
    >= out_features are exactly 0.0 so downstream argmax/loss can consume the
    padded block directly (avoids a lane-sparse slice dispatch)."""
    N, C, H, W = x_nchw.shape
    M = N * C
    K = H * W
    # Same as x.view(-1, H*W) in the PyTorch forward; a free bitcast for
    # contiguous NCHW input. Stays f32 — the bf16 cast happens in-kernel.
    x2 = x_nchw.reshape(M, K).astype(jnp.float32)
    hidden = w1_p.shape[1]

    if M <= SMALL_M:
        # Launch-bound regime: one VMEM tile, no grid.
        vmem = pl.BlockSpec(memory_space=pltpu.MemorySpace.VMEM)
        return pl.pallas_call(
            mlp_kernel,
            out_shape=jax.ShapeDtypeStruct((M, OUT_PAD), jnp.float32),
            in_specs=[vmem, vmem, vmem, vmem, vmem],
            out_specs=vmem,
        )(x2, w1_p, b1_p, w2_p, b2_p)

    # Batched regime: grid over M, weights resident, x/out double-buffered.
    Mp = pl.cdiv(M, TM) * TM
    if Mp != M:
        x2 = jnp.pad(x2, ((0, Mp - M), (0, 0)))
    y_pad = pl.pallas_call(
        mlp_kernel,
        out_shape=jax.ShapeDtypeStruct((Mp, OUT_PAD), jnp.float32),
        grid=(Mp // TM,),
        in_specs=[
            pl.BlockSpec((TM, K), lambda i: (i, 0)),
            pl.BlockSpec((K, hidden), lambda i: (0, 0)),
            pl.BlockSpec((1, hidden), lambda i: (0, 0)),
            pl.BlockSpec((hidden, OUT_PAD), lambda i: (0, 0)),
            pl.BlockSpec((1, OUT_PAD), lambda i: (0, 0)),
        ],
        out_specs=pl.BlockSpec((TM, OUT_PAD), lambda i: (i, 0)),
        compiler_params=pltpu.CompilerParams(
            dimension_semantics=("parallel",),      # v7x: shard rows over 2 TCs
            vmem_limit_bytes=64 << 20,
        ),
    )(x2, w1_p, b1_p, w2_p, b2_p)
    return y_pad[:M] if Mp != M else y_pad


def init_linear_params(key, fan_in, fan_out):
    # Deterministic PyTorch-Linear-style init: U(-1/sqrt(fan_in), 1/sqrt(fan_in)).
    kw, kb = jax.random.split(key)
    bound = 1.0 / jnp.sqrt(jnp.float32(fan_in))
    w = jax.random.uniform(kw, (fan_in, fan_out), jnp.float32, -bound, bound)
    b = jax.random.uniform(kb, (fan_out,), jnp.float32, -bound, bound)
    return w, b


def mlp_reference(x_nchw, w1, b1, w2, b2):
    # Pure-JAX f32 reference matching the PyTorch forward (dropout in eval).
    N, C, H, W = x_nchw.shape
    x = x_nchw.reshape(N * C, H * W).astype(jnp.float32)
    h = x @ w1 + b1
    h = jnp.where(h > 0, h, LEAKY_SLOPE * h)
    y = h @ w2 + b2
    return jax.nn.softmax(y, axis=1)


if __name__ == "__main__":
    # x: (batch=2, channels=4, 16, 16) -> flattened (8, 256)
    # input_size = 16*16 = 256, hidden_size = 32, output_size = 10
    N, C, Hs, Ws = 2, 4, 16, 16
    input_size = Hs * Ws
    hidden_size = 32
    output_size = 10

    key = jax.random.PRNGKey(0)
    kx, k1, k2, kx_big = jax.random.split(key, 4)

    x = jax.random.normal(kx, (N, C, Hs, Ws), dtype=jnp.float32)
    w1, b1 = init_linear_params(k1, input_size, hidden_size)
    w2, b2 = init_linear_params(k2, hidden_size, output_size)

    w1_p, b1_p, w2_p, b2_p, out_f = prepare_params(w1, b1, w2, b2)

    # --- tiny-M (no-grid) path -------------------------------------------
    out_pad = mlp_forward(x, w1_p, b1_p, w2_p, b2_p)
    out_pad = jax.block_until_ready(out_pad)
    assert out_pad.shape == (N * C, OUT_PAD)
    out = out_pad[:, :out_f]                       # padded lanes are exactly 0
    assert jnp.allclose(jnp.sum(out_pad, axis=1), 1.0, atol=1e-4)
    ref = mlp_reference(x, w1, b1, w2, b2)
    assert jnp.allclose(out, ref, atol=2e-2), float(jnp.max(jnp.abs(out - ref)))

    # --- batched (gridded, weights-resident) path -------------------------
    Nb = 128                                        # M = 512 > SMALL_M
    x_big = jax.random.normal(kx_big, (Nb, C, Hs, Ws), dtype=jnp.float32)
    out_big_pad = jax.block_until_ready(
        mlp_forward(x_big, w1_p, b1_p, w2_p, b2_p))
    assert out_big_pad.shape == (Nb * C, OUT_PAD)
    ref_big = mlp_reference(x_big, w1, b1, w2, b2)
    assert jnp.allclose(out_big_pad[:, :out_f], ref_big, atol=2e-2), float(
        jnp.max(jnp.abs(out_big_pad[:, :out_f] - ref_big)))
    assert jnp.allclose(jnp.sum(out_big_pad, axis=1), 1.0, atol=1e-4)

    print("KERNEL_OK")
</pallas_src>

<mosaic_0001>
module attributes {stable_mosaic.version = 11 : i64} {
  func.func @mlp_kernel(%arg0: memref<8x256xf32, #tpu.memory_space<vmem>>, %arg1: memref<256x32xbf16, #tpu.memory_space<vmem>>, %arg2: memref<1x32xf32, #tpu.memory_space<vmem>>, %arg3: memref<32x128xbf16, #tpu.memory_space<vmem>>, %arg4: memref<1x128xf32, #tpu.memory_space<vmem>>, %arg5: memref<8x128xf32, #tpu.memory_space<vmem>>) attributes {dimension_semantics = [], scalar_prefetch = 0 : i64, scratch_operands = 0 : i64, tpu.core_type = #tpu.core_type<tc>} {
    %c0 = arith.constant 0 : index
    %c0_0 = arith.constant 0 : index
    %0 = vector.load %arg0[%c0, %c0_0] : memref<8x256xf32, #tpu.memory_space<vmem>>, vector<8x256xf32>
    %1 = arith.truncf %0 : vector<8x256xf32> to vector<8x256xbf16>
    %c0_1 = arith.constant 0 : index
    %c0_2 = arith.constant 0 : index
    %2 = vector.load %arg1[%c0_1, %c0_2] : memref<256x32xbf16, #tpu.memory_space<vmem>>, vector<256x32xbf16>
    %cst = arith.constant dense<0.000000e+00> : vector<8x32xf32>
    %3 = tpu.matmul %1, %2, %cst {dimension_numbers = #tpu.dot_dimension_numbers<[1], [0], [0], [1], [0, 0, 1, 1], [], []>} : vector<8x256xbf16>, vector<256x32xbf16>, vector<8x32xf32> -> vector<8x32xf32>
    %c0_3 = arith.constant 0 : index
    %c0_4 = arith.constant 0 : index
    %4 = vector.load %arg2[%c0_3, %c0_4] : memref<1x32xf32, #tpu.memory_space<vmem>>, vector<1x32xf32>
    %5 = vector.broadcast %4 : vector<1x32xf32> to vector<8x32xf32>
    %6 = arith.addf %3, %5 : vector<8x32xf32>
    %cst_5 = arith.constant 0.000000e+00 : f32
    %7 = vector.broadcast %cst_5 : f32 to vector<8x32xf32>
    %8 = arith.cmpf ogt, %6, %7 : vector<8x32xf32>
    %cst_6 = arith.constant 0.00999999977 : f32
    %9 = vector.broadcast %cst_6 : f32 to vector<8x32xf32>
    %10 = arith.mulf %9, %6 : vector<8x32xf32>
    %11 = arith.select %8, %6, %10 : vector<8x32xi1>, vector<8x32xf32>
    %12 = arith.truncf %11 : vector<8x32xf32> to vector<8x32xbf16>
    %c0_7 = arith.constant 0 : index
    %c0_8 = arith.constant 0 : index
    %13 = vector.load %arg3[%c0_7, %c0_8] : memref<32x128xbf16, #tpu.memory_space<vmem>>, vector<32x128xbf16>
    %cst_9 = arith.constant dense<0.000000e+00> : vector<8x128xf32>
    %14 = tpu.matmul %12, %13, %cst_9 {dimension_numbers = #tpu.dot_dimension_numbers<[1], [0], [0], [1], [0, 0, 1, 1], [], []>} : vector<8x32xbf16>, vector<32x128xbf16>, vector<8x128xf32> -> vector<8x128xf32>
    %c0_10 = arith.constant 0 : index
    %c0_11 = arith.constant 0 : index
    %15 = vector.load %arg4[%c0_10, %c0_11] : memref<1x128xf32, #tpu.memory_space<vmem>>, vector<1x128xf32>
    %16 = vector.broadcast %15 : vector<1x128xf32> to vector<8x128xf32>
    %17 = arith.addf %14, %16 : vector<8x128xf32>
    %cst_12 = arith.constant dense<0xFF800000> : vector<8xf32>
    %18 = vector.multi_reduction <maximumf>, %17, %cst_12 [1] : vector<8x128xf32> to vector<8xf32>
    %19 = vector.shape_cast %18 : vector<8xf32> to vector<8x1xf32>
    %20 = vector.broadcast %19 : vector<8x1xf32> to vector<8x128xf32>
    %21 = arith.subf %17, %20 : vector<8x128xf32>
    %22 = math.exp %21 : vector<8x128xf32>
    %cst_13 = arith.constant dense<0.000000e+00> : vector<8xf32>
    %23 = vector.multi_reduction <add>, %22, %cst_13 [1] : vector<8x128xf32> to vector<8xf32>
    %24 = vector.shape_cast %23 : vector<8xf32> to vector<8x1xf32>
    %25 = tpu.reciprocal %24 {approx = true} : vector<8x1xf32> -> vector<8x1xf32>
    %26 = arith.mulf %24, %25 : vector<8x1xf32>
    %cst_14 = arith.constant 2.000000e+00 : f32
    %27 = vector.broadcast %cst_14 : f32 to vector<8x1xf32>
    %28 = arith.subf %27, %26 : vector<8x1xf32>
    %29 = arith.mulf %25, %28 : vector<8x1xf32>
    %30 = vector.broadcast %29 : vector<8x1xf32> to vector<8x128xf32>
    %31 = arith.mulf %22, %30 : vector<8x128xf32>
    %c0_15 = arith.constant 0 : index
    %c0_16 = arith.constant 0 : index
    %32 = vector.load %arg5[%c0_15, %c0_16] : memref<8x128xf32, #tpu.memory_space<vmem>>, vector<8x128xf32>
    tpu.vector_store %arg5[%c0_15, %c0_16], %31 {strides = array<i32>} : memref<8x128xf32, #tpu.memory_space<vmem>>, vector<8x128xf32>,
    return
  }
}

</mosaic_0001>

<bundles_post_ra>
// kernel: mlp_forward.1
= control target key start
LH: loop header
LB: loop body
LE: loop exit
PB: predicated region body
PF: predicated region fallthrough
CT: control target
= control target key end

     0   :  { %s478_s0 = inlined_call_operand.vmem [shape: f32[8,256], index: 0, kind: input, shape index: {}]   ;;  %s479_s1 = inlined_call_operand.vmem [shape: bf16[256,32], index: 1, kind: input, shape index: {}]   ;;  %s480_s2 = inlined_call_operand.vmem [shape: f32[1,32], index: 2, kind: input, shape index: {}]   ;;  %s481_s3 = inlined_call_operand.vmem [shape: bf16[32,128], index: 3, kind: input, shape index: {}]   ;;  %s482_s4 = inlined_call_operand.vmem [shape: f32[1,128], index: 4, kind: input, shape index: {}]   ;;  %s483_s5 = inlined_call_operand.hbm [shape: f32[8,128], index: 5, kind: output, shape index: {}]  }
   0x1   :  { %v334_v0 = vld [vmem:[%s479_s1 + $0x38] sm:$0xff]  ;;  %v333_v2 = vld [vmem:[%s479_s1 + $0x30] sm:$0xff]  ;;  %v332_v4 = vld [vmem:[%s479_s1 + $0x28] sm:$0xff] }
   0x2   :  { %v342_v1 = vld [vmem:[%s479_s1 + $0x78] sm:$0xff]  ;;  %158 = vmatpush.bf16.msra.mxu0 %v334_v0  ;;  %v341_v3 = vld [vmem:[%s479_s1 + $0x70] sm:$0xff]  ;;  %v340_v5 = vld [vmem:[%s479_s1 + $0x68] sm:$0xff] }
   0x3   :  { %171 = vmatpush.bf16.msra.mxu1 %v342_v1 }
   0x6   :  { %159 = vmatpush.bf16.msra.mxu0 %v333_v2 }
   0x7   :  { %172 = vmatpush.bf16.msra.mxu1 %v341_v3 }
   0x8   :  { %10 = vsyncpa [#allocation3], 0  ;;  %v331_v6 = vld [vmem:[%s479_s1 + $0x20] sm:$0xff]  ;;  %v330_v8 = vld [vmem:[%s479_s1 + $0x18] sm:$0xff]  ;;  %vm208_vm1 = vcmask 261120  }
   0x9   :  { %v339_v7 = vld [vmem:[%s479_s1 + $0x60] sm:$0xff]  ;;  %v338_v9 = vld [vmem:[%s479_s1 + $0x58] sm:$0xff]  ;;  %v329_v10 = vld [vmem:[%s479_s1 + $0x10] sm:$0xff] }
   0xa   :  { %160 = vmatpush.bf16.msra.mxu0 %v332_v4  ;;  %v337_v11 = vld [vmem:[%s479_s1 + $0x50] sm:$0xff]  ;;  %v328_v12 = vld [vmem:[%s479_s1 + $0x8] sm:$0xff]  ;;  %v327_v14 = vld [vmem:[%s479_s1] sm:$0xff] }
   0xb   :  { %173 = vmatpush.bf16.msra.mxu1 %v340_v5  ;;  %v336_v13 = vld [vmem:[%s479_s1 + $0x48] sm:$0xff]  ;;  %v335_v15 = vld [vmem:[%s479_s1 + $0x40] sm:$0xff] }
   0xc   :  { %v22_v16 = vld [vmem:[%s478_s0] sm:$0xff]  ;;  %v23_v17 = vld [vmem:[%s478_s0 + $0x8] sm:$0xff] }
   0xd   :  { %v24_v18 = vpack.c.bf16 %v22_v16, %v22_v16  ;;  %v25_v19 = vpack.c.bf16 %v23_v17, %v23_v17  ;;  %v344_v20 = vld [vmem:[%s481_s3 + $0x8] sm:$0xff]  ;;  %v343_v21 = vld [vmem:[%s481_s3] sm:$0xff] }
   0xe   :  { %161 = vmatpush.bf16.msra.mxu0 %v331_v6  ;;  %218 = vmatpush.bf16.msra.mxu2 %v344_v20  ;;  %v346_v22 = vld [vmem:[%s480_s2] ss:$0 sm:$0xff]  ;;  %s378_s2 = smov [#allocation2]  }
   0xf   :  { %174 = vmatpush.bf16.msra.mxu1 %v339_v7  ;;  %v347_v32 = vld [vmem:[%s482_s4] ss:$0 sm:$0xff]  ;;  %s243_s3 = sshll.u32 %s378_s2, 4  ;;  %s245_s4 = sshll.u32 %s483_s5, 4  ;;  %s244_s3 = int_to_ptr.vmem [resolvable:$true] %s243_s3  ;;  %s246_s4 = int_to_ptr.hbm [resolvable:$true] %s245_s4 }
  0x12   :  { %162 = vmatpush.bf16.msra.mxu0 %v330_v8  ;;  %219 = vmatpush.bf16.msra.mxu2 %v343_v21 }
  0x13   :  { %175 = vmatpush.bf16.msra.mxu1 %v338_v9 }
  0x16   :  { %163 = vmatpush.bf16.msra.mxu0 %v329_v10 }
  0x17   :  { %176 = vmatpush.bf16.msra.mxu1 %v337_v11 }
  0x1a   :  { %164 = vmatpush.bf16.msra.mxu0 %v328_v12 }
  0x1b   :  { %177 = vmatpush.bf16.msra.mxu1 %v336_v13 }
  0x1e   :  { %165 = vmatpush.bf16.msra.mxu0 %v327_v14 }
  0x1f   :  { %178 = vmatpush.bf16.msra.mxu1 %v335_v15 }
  0x21   :  { %166 = vmatmul.bf16.vlgmr.msra.gmra.mxu0 %v24_v18 }
  0x22   :  { %179 = vmatmul.bf16.vlgmr.msra.gmra.mxu1 %v25_v19 }
  0x9e   :  { %v167_v23 = vpop.f32.mrf.mxu0 }
  0x9f   :  { %v180_v24 = vpop.f32.mrf.mxu1  ;;  %v168_v25 = vadd.f32 %v346_v22, %v167_v23 }
  0xa1   :  { %v181_v26 = vadd.f32 %v180_v24, %v168_v25 }
  0xa3   :  { %vm184_vm0 = vcmp.gt.f32.partialorder %v181_v26, 0.0  ;;  %v185_v27 = vmul.f32 0.01, %v181_v26 }
  0xa5   :  { %v186_v28 = vsel %vm184_vm0, %v181_v26, %v185_v27 }
  0xa6   :  { %v169_v29 = vpop.f32.mrf.mxu0  ;;  %v187_v31 = vpack.c.bf16 %v186_v28, %v186_v28 }
  0xa7   :  { %v182_v30 = vpop.f32.mrf.mxu1 }
  0xa8   :  { %326 = vmatmul.msk.bf16.vlgmr.msra.gmra.mxu2 %vm208_vm1, %v187_v31 }
 0x12b   :  { %v221_v33 = vpop.f32.mrf.mxu2 }
 0x12c   :  { %v222_v34 = vadd.f32 %v347_v32, %v221_v33 }
 0x12e   :  { %225 = vmax.xlane.f32.xlu0 %v222_v34 }
 0x133   :  { %v223_v35 = vpop.f32.mrf.mxu2 }
 0x1a1   :  { %v226_v36 = vpop.xlane.xlu0 %225 }
 0x1a2   :  { %v227_v37 = vsub.f32 %v222_v34, %v226_v36 }
 0x1a4   :  { %v228_v38 = vmul.f32 1.442695, %v227_v37 }
 0x1a6   :  { %348 = vpow2.f32 %v228_v38 }
 0x1ac   :  { %v349_v39 = vpop.eup %348 }
 0x1ad   :  { %230 = vadd.xlane.f32.xlu0 %v349_v39 }
 0x220   :  { %v231_v40 = vpop.xlane.xlu0 %230 }
 0x221   :  { %350 = vrcp.f32 %v231_v40 }
 0x227   :  { %v351_v41 = vpop.eup %350 }
 0x228   :  { %v233_v42 = vmul.f32 %v351_v41, %v231_v40 }
 0x22a   :  { %v234_v43 = vsub.f32 2.0, %v233_v42 }
 0x22c   :  { %v235_v44 = vmul.f32 %v351_v41, %v234_v43 }
 0x22e   :  { %v236_v45 = vmul.f32 %v349_v39, %v235_v44 }
 0x230   :  { %237 = vst [vmem:[#allocation2] sm:$0xff] %v236_v45 }
 0x231   :  { %248 = dma.vmem_to_hbm [thread:$0]  %s244_s3, 128, %s246_s4, [#allocation3]  }
 0x232   :  { %376 = dma.done.wait [#allocation3], 128  }
 0x233   :  { %377 = vsyncadd [#allocation3], 4294967168 }
 0x234   :  { %253 = vsyncpa [#allocation3], 1 }

</bundles_post_ra>
